<compile_context>
chip_gen: v7x
topology: tpu7x:2x2x1
jax: 0.10.0
libtpu: 0.0.40
codegen_flags: <defaults>
</compile_context>

<pallas_src>
import jax
import jax.numpy as jnp
from jax.experimental import pallas as pl
from jax.experimental.pallas import tpu as pltpu

_MEAN = (0.485, 0.456, 0.406)
_STD = (0.229, 0.224, 0.225)


def _imgnormalize_kernel(scale_ref, bias_ref, x_ref, o_ref):
    # x_ref / o_ref: (TR, TL) tiles. scale_ref / bias_ref: (TR, 1) f32,
    # broadcast along the lane dimension. Affine in f32, cast back on store.
    x = x_ref[...].astype(jnp.float32)
    o_ref[...] = (x * scale_ref[...] + bias_ref[...]).astype(o_ref.dtype)


def _pick_tile(dim: int, unit: int, cap: int) -> int:
    """Largest multiple of `unit` that evenly divides `dim` and is <= `cap`.

    Falls back to the full extent `dim` when `dim` <= `cap`, or when `dim` is
    not a multiple of `unit` (a full-extent block dim is always legal).
    """
    if dim <= cap or dim % unit != 0:
        return dim
    c = (cap // unit) * unit
    while c >= unit:
        if dim % c == 0:
            return c
        c -= unit
    return dim  # unreachable: `unit` divides `dim` and unit <= cap


def imgnormalize(x: jax.Array) -> jax.Array:
    """Normalize an NCHW image batch with the fixed ImageNet mean/std."""
    N, C, H, W = x.shape
    if C != 3:
        raise ValueError("imgnormalize expects 3 channels (RGB)")
    if not jnp.issubdtype(x.dtype, jnp.floating):
        raise TypeError("imgnormalize expects a floating-point input dtype")

    R, L = N * C, H * W
    itemsize = jnp.dtype(x.dtype).itemsize

    # Fold the divide: y = x * scale + bias (scale/bias in float32).
    std = jnp.asarray(_STD, jnp.float32)
    mean = jnp.asarray(_MEAN, jnp.float32)
    scale_c = 1.0 / std
    bias_c = -mean / std
    scale_rows = jnp.tile(scale_c, N).reshape(R, 1)
    bias_rows = jnp.tile(bias_c, N).reshape(R, 1)

    # Lane-dense 2-D view: row = (n, c), column = flattened (h, w).
    x2 = x.reshape(R, L)

    # Block selection: ~2 MiB of x per block; lane tile a multiple of 128,
    # sublane tile a multiple of 8 (or full extent). Divisor-based so the
    # grid tiles the array exactly (no ragged edge blocks).
    target_elems = max(8 * 128, (2 << 20) // itemsize)
    tl = _pick_tile(L, 128, max(128, target_elems // 8))
    tr = _pick_tile(R, 8, max(8, target_elems // tl))
    if tr * tl > 4 * target_elems:
        # `tr` was forced to the full row extent (R not a multiple of 8);
        # shrink the lane tile to stay near the VMEM budget.
        tl = _pick_tile(L, 128, max(128, target_elems // tr))
    # TODO(synk): if both R % 8 != 0 and H*W % 128 != 0 for a very large
    # input, blocks degenerate to full extents; a ragged (pl.cdiv) grid or
    # wrapper-side padding would be needed to tile that corner case.

    grid = (R // tr, L // tl)

    # VMEM estimate: in + out, double-buffered, sublane-padded rows.
    padded_rows = -(-tr // 8) * 8
    block_bytes = padded_rows * tl * itemsize
    vmem_needed = 5 * block_bytes + (2 << 20)
    compiler_kwargs = dict(dimension_semantics=("parallel", "parallel"))
    if vmem_needed > (12 << 20):
        compiler_kwargs["vmem_limit_bytes"] = int(min(vmem_needed, 48 << 20))

    n_elems = N * C * H * W
    cost = pl.CostEstimate(
        flops=2 * n_elems,
        transcendentals=0,
        bytes_accessed=2 * n_elems * itemsize + 2 * R * 4,
    )

    out2 = pl.pallas_call(
        _imgnormalize_kernel,
        out_shape=jax.ShapeDtypeStruct((R, L), x.dtype),
        grid=grid,
        in_specs=[
            pl.BlockSpec((tr, 1), lambda r, l: (r, 0)),   # scale (per row)
            pl.BlockSpec((tr, 1), lambda r, l: (r, 0)),   # bias  (per row)
            pl.BlockSpec((tr, tl), lambda r, l: (r, l)),  # x
        ],
        out_specs=pl.BlockSpec((tr, tl), lambda r, l: (r, l)),
        compiler_params=pltpu.CompilerParams(**compiler_kwargs),
        cost_estimate=cost,
    )(scale_rows, bias_rows, x2)

    return out2.reshape(N, C, H, W)


if __name__ == "__main__":
    key = jax.random.PRNGKey(0)
    # Small NCHW input consistent with the module (3 RGB channels).
    x = jax.random.uniform(key, (2, 3, 16, 16), dtype=jnp.float32)

    out = jax.block_until_ready(imgnormalize(x))

    # Reference in plain JAX (same math as the PyTorch forward).
    mean = jnp.asarray(_MEAN, dtype=x.dtype)[None, :, None, None]
    std = jnp.asarray(_STD, dtype=x.dtype)[None, :, None, None]
    ref = (x - mean) / std

    assert out.shape == x.shape and out.dtype == x.dtype
    assert jnp.allclose(out, ref, atol=1e-5, rtol=1e-5), float(
        jnp.max(jnp.abs(out - ref)))

    print("KERNEL_OK")
</pallas_src>

<mosaic_0001>
module attributes {stable_mosaic.version = 11 : i64} {
  func.func @_imgnormalize_kernel(%arg0: i32, %arg1: i32, %arg2: memref<6x1xf32, #tpu.memory_space<vmem>>, %arg3: memref<6x1xf32, #tpu.memory_space<vmem>>, %arg4: memref<6x256xf32, #tpu.memory_space<vmem>>, %arg5: memref<6x256xf32, #tpu.memory_space<vmem>>) attributes {dimension_semantics = [#tpu.dimension_semantics<parallel>, #tpu.dimension_semantics<parallel>], iteration_bounds = array<i64: 1, 1>, scalar_prefetch = 0 : i64, scratch_operands = 0 : i64, tpu.core_type = #tpu.core_type<tc>, window_params = [{transform_indices = @transform_0, window_bounds = array<i64: 6, 1>}, {transform_indices = @transform_1, window_bounds = array<i64: 6, 1>}, {transform_indices = @transform_2, window_bounds = array<i64: 6, 256>}, {transform_indices = @transform_3, window_bounds = array<i64: 6, 256>}]} {
    %c0 = arith.constant 0 : index
    %c0_0 = arith.constant 0 : index
    %0 = vector.load %arg4[%c0, %c0_0] : memref<6x256xf32, #tpu.memory_space<vmem>>, vector<6x256xf32>
    %c0_1 = arith.constant 0 : index
    %c0_2 = arith.constant 0 : index
    %1 = vector.load %arg2[%c0_1, %c0_2] : memref<6x1xf32, #tpu.memory_space<vmem>>, vector<6x1xf32>
    %2 = vector.broadcast %1 : vector<6x1xf32> to vector<6x256xf32>
    %3 = arith.mulf %0, %2 : vector<6x256xf32>
    %c0_3 = arith.constant 0 : index
    %c0_4 = arith.constant 0 : index
    %4 = vector.load %arg3[%c0_3, %c0_4] : memref<6x1xf32, #tpu.memory_space<vmem>>, vector<6x1xf32>
    %5 = vector.broadcast %4 : vector<6x1xf32> to vector<6x256xf32>
    %6 = arith.addf %3, %5 : vector<6x256xf32>
    %c0_5 = arith.constant 0 : index
    %c0_6 = arith.constant 0 : index
    %7 = vector.load %arg5[%c0_5, %c0_6] : memref<6x256xf32, #tpu.memory_space<vmem>>, vector<6x256xf32>
    tpu.vector_store %arg5[%c0_5, %c0_6], %6 {strides = array<i32>} : memref<6x256xf32, #tpu.memory_space<vmem>>, vector<6x256xf32>,
    return
  }
  func.func @transform_0(%arg0: i32, %arg1: i32) -> (i32, i32) {
    %c0_i32 = arith.constant 0 : i32
    %c0_i32_0 = arith.constant 0 : i32
    return %arg0, %c0_i32 : i32, i32
  }
  func.func @transform_1(%arg0: i32, %arg1: i32) -> (i32, i32) {
    %c0_i32 = arith.constant 0 : i32
    %c0_i32_0 = arith.constant 0 : i32
    return %arg0, %c0_i32 : i32, i32
  }
  func.func @transform_2(%arg0: i32, %arg1: i32) -> (i32, i32) {
    %c0_i32 = arith.constant 0 : i32
    return %arg0, %arg1 : i32, i32
  }
  func.func @transform_3(%arg0: i32, %arg1: i32) -> (i32, i32) {
    %c0_i32 = arith.constant 0 : i32
    return %arg0, %arg1 : i32, i32
  }
}

</mosaic_0001>

<bundles_post_ra>
// kernel: tpu_custom_call.1
= control target key start
LH: loop header
LB: loop body
LE: loop exit
PB: predicated region body
PF: predicated region fallthrough
CT: control target
= control target key end

     0   :  { %v76_v1 = vmov 0   ;;  %s122_s0 = inlined_call_operand.vmem [shape: f32[6,1], index: 0, kind: input, shape index: {}]   ;;  %s123_s1 = inlined_call_operand.vmem [shape: f32[6,1], index: 1, kind: input, shape index: {}]   ;;  %s124_s2 = inlined_call_operand.vmem [shape: f32[6,256], index: 2, kind: input, shape index: {}]   ;;  %s125_s3 = inlined_call_operand.hbm [shape: f32[6,256], index: 3, kind: output, shape index: {}]  }
   0x1   :  { %v17_v0 = vld [vmem:[%s122_s0] sm:$0x3f]  ;;  %51 = vset.pattern.permute.xlu0 %v76_v1 }
   0x2   :  { %8 = vsyncpa [#allocation3], 0  ;;  %20 = vperm.xlu0 %51, %v17_v0   ;;  %v25_v2 = vld [vmem:[%s123_s1] sm:$0x3f]  ;;  %v16_v5 = vld [vmem:[%s124_s2 + $0x8] sm:$0x3f] }
   0x3   :  { %v15_v4 = vld [vmem:[%s124_s2] sm:$0x3f]  ;;  %s77_s20 = smov [#allocation2]  }
   0x4   :  { %s41_s0 = sshll.u32 %s77_s20, 4  ;;  %s42_s0 = int_to_ptr.vmem [resolvable:$true] %s41_s0 }
   0x5   :  { %s52_s1 = scalar_lea.vmem %s42_s0, 256  ;;  %p57_p1 = scmp.lt.s32.totalorder %s42_s0, %s42_s0 }
   0x6   :  { %28 = vperm.xlu0 %51, %v25_v2   ;;  %p53_p0 = scmp.ne.s32.totalorder %s42_s0, %s52_s1  ;;  %p58_p2 = scmp.lt.s32.totalorder %s52_s1, %s52_s1 }
   0x8   :  { %p59_p3 = por %p58_p2, %p57_p1 }
   0xa   :  { %p60_p4 = pnand %p59_p3, %p53_p0 }
  0x81   :  { %v21_v3 = vpop.permute.xlu0 %20 }
  0x82   :  { %v23_v6 = vmul.f32 %v21_v3, %v15_v4  ;;  %v24_v7 = vmul.f32 %v21_v3, %v16_v5 }
  0x85   :  { %v29_v8 = vpop.permute.xlu0 %28 }
  0x86   :  { %v31_v9 = vadd.f32 %v29_v8, %v23_v6  ;;  %v32_v10 = vadd.f32 %v29_v8, %v24_v7 }
  0x88   :  { %33 = vst [vmem:[#allocation2] sm:$0x3f] %v31_v9  ;;  %34 = vst [vmem:[#allocation2 + $0x8] sm:$0x3f] %v32_v10 }
  0x89   :  { %63 = shalt.err (!%p60_p4)
}
  0x8a   :  { %s64_s2 = scalar_lea.hbm %s125_s3, 256 }
  0x8b   :  { %p65_p5 = scmp.ne.s32.totalorder %s125_s3, %s64_s2  ;;  %p68_p6 = scmp.lt.u32.totalorder %s64_s2, %s125_s3 }
  0x8d   :  { %p70_p7 = pnand %p68_p6, %p65_p5 }
  0x8f   :  { %73 = shalt.err (!%p70_p7)
}
  0x90   :  { %44 = dma.vmem_to_hbm [thread:$0]  %s42_s0, 256, %s125_s3, [#allocation3]  }
  0x91   :  { %74 = dma.done.wait [#allocation3], 256  }
  0x92   :  { %75 = vsyncadd [#allocation3], 4294967040 }
  0x93   :  { %48 = vsyncpa [#allocation3], 1 }

</bundles_post_ra>
